<compile_context>
chip_gen: v7x
topology: tpu7x:2x2x1
jax: 0.10.0
libtpu: 0.0.40
codegen_flags: <defaults>
</compile_context>

<pallas_src>
import functools

import jax
import jax.numpy as jnp
from jax.experimental import pallas as pl
from jax.experimental.pallas import tpu as pltpu


# -----------------------------------------------------------------------------
# Kernel
# -----------------------------------------------------------------------------
def _silu(v, *, approx):
    if approx:
        # exp + approx-reciprocal both land on the EUP slot (idle vs. VALU).
        return v * pl.reciprocal(1.0 + jnp.exp(-v), approx=True)
    return v * jax.nn.sigmoid(v)


def _mlp_kernel(*refs, n_layers, matmul_dtype, approx_silu):
    """Full MLP forward for one feature-major batch tile, entirely in VMEM.

    refs = (x_ref, w1, b1, ..., wN, bN, o_ref)
      x_ref: (in_features, tb) f32        (batch in the 128-lane axis)
      w_k:   (fan_out, fan_in)            b_k: (fan_out, 1) f32
      o_ref: (out_features, tb) f32       (lane-dense stores)
    """
    x_ref, o_ref = refs[0], refs[-1]
    param_refs = refs[1:-1]

    h = x_ref[...]                                            # (in, tb) f32
    for layer in range(n_layers):
        w_ref = param_refs[2 * layer]
        b_ref = param_refs[2 * layer + 1]
        acc = jnp.dot(w_ref[...].astype(matmul_dtype),
                      h.astype(matmul_dtype),
                      preferred_element_type=jnp.float32)     # (fan_out, tb)
        # bias add + SiLU stay f32 (v5e VPU/EUP have no bf16 path).
        h = _silu(acc + b_ref[...], approx=approx_silu)
    # do_output_activation=True -> SiLU is also applied to the output layer.
    o_ref[...] = h.astype(o_ref.dtype)


# -----------------------------------------------------------------------------
# Wrapper
# -----------------------------------------------------------------------------
def _round_up(x, m):
    return ((x + m - 1) // m) * m


def _choose_batch_tile(batch, lane=128, cap=8192):
    """As few near-equal grid steps as possible; tile is a lane (128) multiple."""
    n_steps = max(1, -(-batch // cap))
    return _round_up(-(-batch // n_steps), lane)


@functools.partial(
    jax.jit, static_argnames=("batch_tile", "matmul_dtype", "approx_silu"))
def _forward_impl(x, params, *, batch_tile, matmul_dtype, approx_silu):
    B, in_features = x.shape
    params = list(params)
    weights, biases = params[0::2], params[1::2]
    n_layers = len(weights)
    out_features = weights[-1].shape[0]
    out_dtype = jnp.float32

    tb = batch_tile
    grid = pl.cdiv(B, tb)
    B_pad = grid * tb

    # Feature-major input: (in_features, B_pad) with batch in the lane axis.
    x_t = jnp.transpose(x.astype(jnp.float32))
    if B_pad != B:
        x_t = jnp.pad(x_t, ((0, 0), (0, B_pad - B)))

    # Weights are tiny: cast once here.  x is NOT cast in the wrapper -- the
    # bf16 feed (if any) happens inside the kernel, avoiding an extra HBM pass.
    if matmul_dtype != jnp.float32:
        weights = [w.astype(matmul_dtype) for w in weights]
    biases = [b.astype(jnp.float32) for b in biases]
    kernel_params = []
    for w, b in zip(weights, biases):
        kernel_params += [w, b]

    x_spec = pl.BlockSpec((in_features, tb), lambda i: (0, i))
    out_spec = pl.BlockSpec((out_features, tb), lambda i: (0, i))
    # Constant index_map -> each param block is fetched once and stays resident.
    param_specs = [
        pl.BlockSpec(p.shape, lambda i, nd=p.ndim: (0,) * nd)
        for p in kernel_params
    ]

    # Advisory cost estimate: 2 MACs per weight element per row; exp +
    # reciprocal (2 EUP ops) per activation element; I/O bytes counted once.
    flops = 2 * B_pad * sum(w.shape[0] * w.shape[1] for w in weights)
    transcendentals = 2 * B_pad * sum(w.shape[0] for w in weights)
    bytes_accessed = int(
        B_pad * in_features * 4 + B_pad * out_features * 4
        + sum(p.size * p.dtype.itemsize for p in kernel_params))

    # VMEM budget: double-buffered x/out tiles, resident params, a few live
    # f32 activations (+ narrow-dtype copies).  Cap at 48 MiB so there is
    # headroom under v7x's 64 MiB physical VMEM.
    widths = [in_features] + [w.shape[0] for w in weights]
    param_bytes = 2 * sum(p.size * p.dtype.itemsize for p in kernel_params)
    est = (2 * tb * in_features * 4 + 2 * tb * out_features * 4
           + param_bytes + 4 * tb * max(widths) * 4)
    vmem_limit = int(min(48 * 1024 * 1024, max(32 * 1024 * 1024, 2 * est)))

    out = pl.pallas_call(
        functools.partial(_mlp_kernel, n_layers=n_layers,
                          matmul_dtype=matmul_dtype, approx_silu=approx_silu),
        out_shape=jax.ShapeDtypeStruct((out_features, B_pad), out_dtype),
        grid_spec=pltpu.PrefetchScalarGridSpec(
            num_scalar_prefetch=0,
            grid=(grid,),
            in_specs=[x_spec] + param_specs,
            out_specs=out_spec,
        ),
        compiler_params=pltpu.CompilerParams(
            # Batch steps are independent.  On 1-TC v5e/v6e the grid is a
            # serial loop either way; on v7x switch this axis to
            # pltpu.CORE_PARALLEL if the batch should shard across the 2 TCs.
            dimension_semantics=("parallel",),
            vmem_limit_bytes=vmem_limit,
        ),
        cost_estimate=pl.CostEstimate(flops=flops,
                                      transcendentals=transcendentals,
                                      bytes_accessed=bytes_accessed),
    )(x_t, *kernel_params)

    return jnp.transpose(out[:, :B])                      # (B, out_features)


def network_forward(x, params, *, batch_tile=None, matmul_dtype=jnp.float32,
                    approx_silu=False):
    """x: (batch, in_features) -> (batch, out_features).

    Defaults give exact f32 math.  matmul_dtype=jnp.bfloat16 and
    approx_silu=True enable the faster (lower-accuracy) MXU/EUP path.
    """
    B = x.shape[0]
    if batch_tile is None:
        tb = _choose_batch_tile(B)
    else:
        tb = _round_up(int(batch_tile), 128)   # lane-dim constraint when grid > 1
    return _forward_impl(x, tuple(params), batch_tile=tb,
                         matmul_dtype=matmul_dtype, approx_silu=approx_silu)


# -----------------------------------------------------------------------------
# Params + pure-JAX reference
# -----------------------------------------------------------------------------
def init_params(key, in_features: int, hidden_dim_factor: int, out_features: int,
                dtype=jnp.float32):
    """nn.Linear-style init (uniform +-1/sqrt(fan_in)).

    Weights are (fan_out, fan_in) (the native nn.Linear layout) and biases
    (fan_out, 1) -- the feature-major layout the kernel consumes directly.
    """
    dims = [
        in_features,
        4 * hidden_dim_factor,
        8 * hidden_dim_factor,
        4 * hidden_dim_factor,
        2 * hidden_dim_factor,
        1 * hidden_dim_factor,
        out_features,
    ]
    params = []
    for fan_in, fan_out in zip(dims[:-1], dims[1:]):
        key, kw, kb = jax.random.split(key, 3)
        bound = float(fan_in) ** -0.5
        w = jax.random.uniform(kw, (fan_out, fan_in), dtype, -bound, bound)
        b = jax.random.uniform(kb, (fan_out, 1), dtype, -bound, bound)
        params += [w, b]
    return params


def network_forward_ref(x, params):
    """Pure-JAX f32 reference of the PyTorch forward (SiLU after every layer)."""
    h = x.astype(jnp.float32)
    for i in range(0, len(params), 2):
        w, b = params[i], params[i + 1]
        h = h @ w.T + b[:, 0]
        h = h * jax.nn.sigmoid(h)
    return h


# TODO(synk): training/IO methods (fit, _train_step, _valid_step, save,
# correct_ansatz) are host-side utilities, not part of the forward pass, and
# are not translated.

if __name__ == "__main__":
    in_features = 6
    hidden_dim_factor = 8          # hidden widths 32, 64, 32, 16, 8
    out_features = 3
    batch = 256

    key = jax.random.PRNGKey(0)
    k_params, k_x = jax.random.split(key)
    params = init_params(k_params, in_features, hidden_dim_factor, out_features)
    x = jax.random.normal(k_x, (batch, in_features), jnp.float32)

    ref = network_forward_ref(x, params)

    # Default path: exact f32 math, single large batch tile (1 grid step).
    out_exact = jax.block_until_ready(network_forward(x, params))
    assert out_exact.shape == (batch, out_features), out_exact.shape
    assert jnp.allclose(out_exact, ref, atol=1e-4, rtol=1e-4), "f32 mismatch vs ref"

    # Explicit smaller tile -> multi-step grid, exercises the pipelined path.
    out_tiled = jax.block_until_ready(network_forward(x, params, batch_tile=128))
    assert out_tiled.shape == (batch, out_features), out_tiled.shape
    assert jnp.allclose(out_tiled, ref, atol=1e-4, rtol=1e-4), "tiled mismatch vs ref"

    # Fast path: bf16 MXU operands + EUP approx-reciprocal SiLU (looser accuracy).
    out_fast = jax.block_until_ready(
        network_forward(x, params, matmul_dtype=jnp.bfloat16, approx_silu=True))
    assert out_fast.shape == (batch, out_features), out_fast.shape
    assert jnp.allclose(out_fast, ref, atol=5e-2, rtol=5e-2), "bf16 mismatch vs ref"

    # Ragged batch (not a multiple of the tile): wrapper pads and slices.
    out_small = jax.block_until_ready(network_forward(x[:6], params))
    assert out_small.shape == (6, out_features), out_small.shape
    assert jnp.allclose(out_small, ref[:6], atol=1e-4, rtol=1e-4), "ragged mismatch"

    print("KERNEL_OK")
</pallas_src>

<mosaic_0001>
module attributes {stable_mosaic.version = 11 : i64} {
  func.func @_mlp_kernel(%arg0: i32, %arg1: memref<6x256xf32, #tpu.memory_space<vmem>>, %arg2: memref<32x6xf32, #tpu.memory_space<vmem>>, %arg3: memref<32x1xf32, #tpu.memory_space<vmem>>, %arg4: memref<64x32xf32, #tpu.memory_space<vmem>>, %arg5: memref<64x1xf32, #tpu.memory_space<vmem>>, %arg6: memref<32x64xf32, #tpu.memory_space<vmem>>, %arg7: memref<32x1xf32, #tpu.memory_space<vmem>>, %arg8: memref<16x32xf32, #tpu.memory_space<vmem>>, %arg9: memref<16x1xf32, #tpu.memory_space<vmem>>, %arg10: memref<8x16xf32, #tpu.memory_space<vmem>>, %arg11: memref<8x1xf32, #tpu.memory_space<vmem>>, %arg12: memref<3x8xf32, #tpu.memory_space<vmem>>, %arg13: memref<3x1xf32, #tpu.memory_space<vmem>>, %arg14: memref<3x256xf32, #tpu.memory_space<vmem>>) attributes {dimension_semantics = [#tpu.dimension_semantics<parallel>], iteration_bounds = array<i64: 1>, scalar_prefetch = 0 : i64, scratch_operands = 0 : i64, tpu.core_type = #tpu.core_type<tc>, window_params = [{transform_indices = @transform_0, window_bounds = array<i64: 6, 256>}, {pipeline_mode = #tpu.pipeline_mode<synchronous>, transform_indices = @transform_1, window_bounds = array<i64: 32, 6>}, {pipeline_mode = #tpu.pipeline_mode<synchronous>, transform_indices = @transform_2, window_bounds = array<i64: 32, 1>}, {pipeline_mode = #tpu.pipeline_mode<synchronous>, transform_indices = @transform_3, window_bounds = array<i64: 64, 32>}, {pipeline_mode = #tpu.pipeline_mode<synchronous>, transform_indices = @transform_4, window_bounds = array<i64: 64, 1>}, {pipeline_mode = #tpu.pipeline_mode<synchronous>, transform_indices = @transform_5, window_bounds = array<i64: 32, 64>}, {pipeline_mode = #tpu.pipeline_mode<synchronous>, transform_indices = @transform_6, window_bounds = array<i64: 32, 1>}, {pipeline_mode = #tpu.pipeline_mode<synchronous>, transform_indices = @transform_7, window_bounds = array<i64: 16, 32>}, {pipeline_mode = #tpu.pipeline_mode<synchronous>, transform_indices = @transform_8, window_bounds = array<i64: 16, 1>}, {pipeline_mode = #tpu.pipeline_mode<synchronous>, transform_indices = @transform_9, window_bounds = array<i64: 8, 16>}, {pipeline_mode = #tpu.pipeline_mode<synchronous>, transform_indices = @transform_10, window_bounds = array<i64: 8, 1>}, {pipeline_mode = #tpu.pipeline_mode<synchronous>, transform_indices = @transform_11, window_bounds = array<i64: 3, 8>}, {pipeline_mode = #tpu.pipeline_mode<synchronous>, transform_indices = @transform_12, window_bounds = array<i64: 3, 1>}, {transform_indices = @transform_13, window_bounds = array<i64: 3, 256>}]} {
    %c0 = arith.constant 0 : index
    %c0_0 = arith.constant 0 : index
    %0 = vector.load %arg1[%c0, %c0_0] : memref<6x256xf32, #tpu.memory_space<vmem>>, vector<6x256xf32>
    %c0_1 = arith.constant 0 : index
    %c0_2 = arith.constant 0 : index
    %1 = vector.load %arg2[%c0_1, %c0_2] : memref<32x6xf32, #tpu.memory_space<vmem>>, vector<32x6xf32>
    %cst = arith.constant dense<0.000000e+00> : vector<32x256xf32>
    %2 = tpu.matmul %1, %0, %cst {dimension_numbers = #tpu.dot_dimension_numbers<[1], [0], [0], [1], [0, 0, 1, 1], [], []>} : vector<32x6xf32>, vector<6x256xf32>, vector<32x256xf32> -> vector<32x256xf32>
    %c0_3 = arith.constant 0 : index
    %c0_4 = arith.constant 0 : index
    %3 = vector.load %arg3[%c0_3, %c0_4] : memref<32x1xf32, #tpu.memory_space<vmem>>, vector<32x1xf32>
    %4 = vector.broadcast %3 : vector<32x1xf32> to vector<32x256xf32>
    %5 = arith.addf %2, %4 : vector<32x256xf32>
    %6 = arith.negf %5 : vector<32x256xf32>
    %7 = math.exp %6 : vector<32x256xf32>
    %cst_5 = arith.constant 1.000000e+00 : f32
    %8 = vector.broadcast %cst_5 : f32 to vector<32x256xf32>
    %9 = arith.addf %8, %7 : vector<32x256xf32>
    %10 = arith.divf %8, %9 : vector<32x256xf32>
    %11 = arith.mulf %5, %10 : vector<32x256xf32>
    %c0_6 = arith.constant 0 : index
    %c0_7 = arith.constant 0 : index
    %12 = vector.load %arg4[%c0_6, %c0_7] : memref<64x32xf32, #tpu.memory_space<vmem>>, vector<64x32xf32>
    %cst_8 = arith.constant dense<0.000000e+00> : vector<64x256xf32>
    %13 = tpu.matmul %12, %11, %cst_8 {dimension_numbers = #tpu.dot_dimension_numbers<[1], [0], [0], [1], [0, 0, 1, 1], [], []>} : vector<64x32xf32>, vector<32x256xf32>, vector<64x256xf32> -> vector<64x256xf32>
    %c0_9 = arith.constant 0 : index
    %c0_10 = arith.constant 0 : index
    %14 = vector.load %arg5[%c0_9, %c0_10] : memref<64x1xf32, #tpu.memory_space<vmem>>, vector<64x1xf32>
    %15 = vector.broadcast %14 : vector<64x1xf32> to vector<64x256xf32>
    %16 = arith.addf %13, %15 : vector<64x256xf32>
    %17 = arith.negf %16 : vector<64x256xf32>
    %18 = math.exp %17 : vector<64x256xf32>
    %cst_11 = arith.constant 1.000000e+00 : f32
    %19 = vector.broadcast %cst_11 : f32 to vector<64x256xf32>
    %20 = arith.addf %19, %18 : vector<64x256xf32>
    %21 = arith.divf %19, %20 : vector<64x256xf32>
    %22 = arith.mulf %16, %21 : vector<64x256xf32>
    %c0_12 = arith.constant 0 : index
    %c0_13 = arith.constant 0 : index
    %23 = vector.load %arg6[%c0_12, %c0_13] : memref<32x64xf32, #tpu.memory_space<vmem>>, vector<32x64xf32>
    %cst_14 = arith.constant dense<0.000000e+00> : vector<32x256xf32>
    %24 = tpu.matmul %23, %22, %cst_14 {dimension_numbers = #tpu.dot_dimension_numbers<[1], [0], [0], [1], [0, 0, 1, 1], [], []>} : vector<32x64xf32>, vector<64x256xf32>, vector<32x256xf32> -> vector<32x256xf32>
    %c0_15 = arith.constant 0 : index
    %c0_16 = arith.constant 0 : index
    %25 = vector.load %arg7[%c0_15, %c0_16] : memref<32x1xf32, #tpu.memory_space<vmem>>, vector<32x1xf32>
    %26 = vector.broadcast %25 : vector<32x1xf32> to vector<32x256xf32>
    %27 = arith.addf %24, %26 : vector<32x256xf32>
    %28 = arith.negf %27 : vector<32x256xf32>
    %29 = math.exp %28 : vector<32x256xf32>
    %cst_17 = arith.constant 1.000000e+00 : f32
    %30 = vector.broadcast %cst_17 : f32 to vector<32x256xf32>
    %31 = arith.addf %30, %29 : vector<32x256xf32>
    %32 = arith.divf %30, %31 : vector<32x256xf32>
    %33 = arith.mulf %27, %32 : vector<32x256xf32>
    %c0_18 = arith.constant 0 : index
    %c0_19 = arith.constant 0 : index
    %34 = vector.load %arg8[%c0_18, %c0_19] : memref<16x32xf32, #tpu.memory_space<vmem>>, vector<16x32xf32>
    %cst_20 = arith.constant dense<0.000000e+00> : vector<16x256xf32>
    %35 = tpu.matmul %34, %33, %cst_20 {dimension_numbers = #tpu.dot_dimension_numbers<[1], [0], [0], [1], [0, 0, 1, 1], [], []>} : vector<16x32xf32>, vector<32x256xf32>, vector<16x256xf32> -> vector<16x256xf32>
    %c0_21 = arith.constant 0 : index
    %c0_22 = arith.constant 0 : index
    %36 = vector.load %arg9[%c0_21, %c0_22] : memref<16x1xf32, #tpu.memory_space<vmem>>, vector<16x1xf32>
    %37 = vector.broadcast %36 : vector<16x1xf32> to vector<16x256xf32>
    %38 = arith.addf %35, %37 : vector<16x256xf32>
    %39 = arith.negf %38 : vector<16x256xf32>
    %40 = math.exp %39 : vector<16x256xf32>
    %cst_23 = arith.constant 1.000000e+00 : f32
    %41 = vector.broadcast %cst_23 : f32 to vector<16x256xf32>
    %42 = arith.addf %41, %40 : vector<16x256xf32>
    %43 = arith.divf %41, %42 : vector<16x256xf32>
    %44 = arith.mulf %38, %43 : vector<16x256xf32>
    %c0_24 = arith.constant 0 : index
    %c0_25 = arith.constant 0 : index
    %45 = vector.load %arg10[%c0_24, %c0_25] : memref<8x16xf32, #tpu.memory_space<vmem>>, vector<8x16xf32>
    %cst_26 = arith.constant dense<0.000000e+00> : vector<8x256xf32>
    %46 = tpu.matmul %45, %44, %cst_26 {dimension_numbers = #tpu.dot_dimension_numbers<[1], [0], [0], [1], [0, 0, 1, 1], [], []>} : vector<8x16xf32>, vector<16x256xf32>, vector<8x256xf32> -> vector<8x256xf32>
    %c0_27 = arith.constant 0 : index
    %c0_28 = arith.constant 0 : index
    %47 = vector.load %arg11[%c0_27, %c0_28] : memref<8x1xf32, #tpu.memory_space<vmem>>, vector<8x1xf32>
    %48 = vector.broadcast %47 : vector<8x1xf32> to vector<8x256xf32>
    %49 = arith.addf %46, %48 : vector<8x256xf32>
    %50 = arith.negf %49 : vector<8x256xf32>
    %51 = math.exp %50 : vector<8x256xf32>
    %cst_29 = arith.constant 1.000000e+00 : f32
    %52 = vector.broadcast %cst_29 : f32 to vector<8x256xf32>
    %53 = arith.addf %52, %51 : vector<8x256xf32>
    %54 = arith.divf %52, %53 : vector<8x256xf32>
    %55 = arith.mulf %49, %54 : vector<8x256xf32>
    %c0_30 = arith.constant 0 : index
    %c0_31 = arith.constant 0 : index
    %56 = vector.load %arg12[%c0_30, %c0_31] : memref<3x8xf32, #tpu.memory_space<vmem>>, vector<3x8xf32>
    %cst_32 = arith.constant dense<0.000000e+00> : vector<3x256xf32>
    %57 = tpu.matmul %56, %55, %cst_32 {dimension_numbers = #tpu.dot_dimension_numbers<[1], [0], [0], [1], [0, 0, 1, 1], [], []>} : vector<3x8xf32>, vector<8x256xf32>, vector<3x256xf32> -> vector<3x256xf32>
    %c0_33 = arith.constant 0 : index
    %c0_34 = arith.constant 0 : index
    %58 = vector.load %arg13[%c0_33, %c0_34] : memref<3x1xf32, #tpu.memory_space<vmem>>, vector<3x1xf32>
    %59 = vector.broadcast %58 : vector<3x1xf32> to vector<3x256xf32>
    %60 = arith.addf %57, %59 : vector<3x256xf32>
    %61 = arith.negf %60 : vector<3x256xf32>
    %62 = math.exp %61 : vector<3x256xf32>
    %cst_35 = arith.constant 1.000000e+00 : f32
    %63 = vector.broadcast %cst_35 : f32 to vector<3x256xf32>
    %64 = arith.addf %63, %62 : vector<3x256xf32>
    %65 = arith.divf %63, %64 : vector<3x256xf32>
    %66 = arith.mulf %60, %65 : vector<3x256xf32>
    %c0_36 = arith.constant 0 : index
    %c0_37 = arith.constant 0 : index
    %67 = vector.load %arg14[%c0_36, %c0_37] : memref<3x256xf32, #tpu.memory_space<vmem>>, vector<3x256xf32>
    tpu.vector_store %arg14[%c0_36, %c0_37], %66 {strides = array<i32>} : memref<3x256xf32, #tpu.memory_space<vmem>>, vector<3x256xf32>,
    return
  }
  func.func @transform_0(%arg0: i32) -> (i32, i32) {
    %c0_i32 = arith.constant 0 : i32
    %c0_i32_0 = arith.constant 0 : i32
    return %c0_i32, %arg0 : i32, i32
  }
  func.func @transform_1(%arg0: i32) -> (i32, i32) {
    %c0_i32 = arith.constant 0 : i32
    %c0_i32_0 = arith.constant 0 : i32
    %c0_i32_1 = arith.constant 0 : i32
    return %c0_i32, %c0_i32_0 : i32, i32
  }
  func.func @transform_2(%arg0: i32) -> (i32, i32) {
    %c0_i32 = arith.constant 0 : i32
    %c0_i32_0 = arith.constant 0 : i32
    %c0_i32_1 = arith.constant 0 : i32
    return %c0_i32, %c0_i32_0 : i32, i32
  }
  func.func @transform_3(%arg0: i32) -> (i32, i32) {
    %c0_i32 = arith.constant 0 : i32
    %c0_i32_0 = arith.constant 0 : i32
    %c0_i32_1 = arith.constant 0 : i32
    return %c0_i32, %c0_i32_0 : i32, i32
  }
  func.func @transform_4(%arg0: i32) -> (i32, i32) {
    %c0_i32 = arith.constant 0 : i32
    %c0_i32_0 = arith.constant 0 : i32
    %c0_i32_1 = arith.constant 0 : i32
    return %c0_i32, %c0_i32_0 : i32, i32
  }
  func.func @transform_5(%arg0: i32) -> (i32, i32) {
    %c0_i32 = arith.constant 0 : i32
    %c0_i32_0 = arith.constant 0 : i32
    %c0_i32_1 = arith.constant 0 : i32
    return %c0_i32, %c0_i32_0 : i32, i32
  }
  func.func @transform_6(%arg0: i32) -> (i32, i32) {
    %c0_i32 = arith.constant 0 : i32
    %c0_i32_0 = arith.constant 0 : i32
    %c0_i32_1 = arith.constant 0 : i32
    return %c0_i32, %c0_i32_0 : i32, i32
  }
  func.func @transform_7(%arg0: i32) -> (i32, i32) {
    %c0_i32 = arith.constant 0 : i32
    %c0_i32_0 = arith.constant 0 : i32
    %c0_i32_1 = arith.constant 0 : i32
    return %c0_i32, %c0_i32_0 : i32, i32
  }
  func.func @transform_8(%arg0: i32) -> (i32, i32) {
    %c0_i32 = arith.constant 0 : i32
    %c0_i32_0 = arith.constant 0 : i32
    %c0_i32_1 = arith.constant 0 : i32
    return %c0_i32, %c0_i32_0 : i32, i32
  }
  func.func @transform_9(%arg0: i32) -> (i32, i32) {
    %c0_i32 = arith.constant 0 : i32
    %c0_i32_0 = arith.constant 0 : i32
    %c0_i32_1 = arith.constant 0 : i32
    return %c0_i32, %c0_i32_0 : i32, i32
  }
  func.func @transform_10(%arg0: i32) -> (i32, i32) {
    %c0_i32 = arith.constant 0 : i32
    %c0_i32_0 = arith.constant 0 : i32
    %c0_i32_1 = arith.constant 0 : i32
    return %c0_i32, %c0_i32_0 : i32, i32
  }
  func.func @transform_11(%arg0: i32) -> (i32, i32) {
    %c0_i32 = arith.constant 0 : i32
    %c0_i32_0 = arith.constant 0 : i32
    %c0_i32_1 = arith.constant 0 : i32
    return %c0_i32, %c0_i32_0 : i32, i32
  }
  func.func @transform_12(%arg0: i32) -> (i32, i32) {
    %c0_i32 = arith.constant 0 : i32
    %c0_i32_0 = arith.constant 0 : i32
    %c0_i32_1 = arith.constant 0 : i32
    return %c0_i32, %c0_i32_0 : i32, i32
  }
  func.func @transform_13(%arg0: i32) -> (i32, i32) {
    %c0_i32 = arith.constant 0 : i32
    %c0_i32_0 = arith.constant 0 : i32
    return %c0_i32, %arg0 : i32, i32
  }
}

</mosaic_0001>

<bundles_post_ra>
// kernel: _forward_impl.1
= control target key start
LH: loop header
LB: loop body
LE: loop exit
PB: predicated region body
PF: predicated region fallthrough
CT: control target
= control target key end

     0   :  { %vm88_vm0 = vcmask 1045504   ;;  %v1355_v2 = vmov 0.0   ;;  %vm75_vm1 = vcmask 48128   ;;  %v1356_v4 = vmov 0   ;;  %s1664_s0 = inlined_call_operand.vmem [shape: f32[6,256], index: 0, kind: input, shape index: {}]   ;;  %s1665_s1 = inlined_call_operand.vmem [shape: f32[32,6], index: 1, kind: input, shape index: {}]   ;;  %s1666_s2 = inlined_call_operand.vmem [shape: f32[32,1], index: 2, kind: input, shape index: {}]   ;;  %s1667_s3 = inlined_call_operand.vmem [shape: f32[64,32], index: 3, kind: input, shape index: {}]   ;;  %s1668_s4 = inlined_call_operand.vmem [shape: f32[64,1], index: 4, kind: input, shape index: {}]   ;;  %s1669_s5 = inlined_call_operand.vmem [shape: f32[32,64], index: 5, kind: input, shape index: {}]   ;;  %s1670_s6 = inlined_call_operand.vmem [shape: f32[32,1], index: 6, kind: input, shape index: {}]   ;;  %s1671_s7 = inlined_call_operand.vmem [shape: f32[16,32], index: 7, kind: input, shape index: {}]   ;;  %s1672_s8 = inlined_call_operand.vmem [shape: f32[16,1], index: 8, kind: input, shape index: {}]   ;;  %s1673_s9 = inlined_call_operand.vmem [shape: f32[8,16], index: 9, kind: input, shape index: {}]   ;;  %s1674_s10 = inlined_call_operand.vmem [shape: f32[8,1], index: 10, kind: input, shape index: {}]   ;;  %s1675_s11 = inlined_call_operand.vmem [shape: f32[3,8], index: 11, kind: input, shape index: {}]   ;;  %s1676_s12 = inlined_call_operand.vmem [shape: f32[3,1], index: 12, kind: input, shape index: {}]   ;;  %s1677_s13 = inlined_call_operand.hbm [shape: f32[3,256], index: 13, kind: output, shape index: {}]  }
   0x1   :  { %v46_v0 = vld [vmem:[%s1664_s0 + $0x8] sm:$0x3f]  ;;  %v45_v1 = vld [vmem:[%s1664_s0] sm:$0x3f]  ;;  %159 = vmatprep.mubr.f32.mxu0 %v1355_v2  ;;  %1169 = vset.pattern.permute.xlu0 %v1356_v4  ;;  %v53_v6 = vld [vmem:[%s1666_s2 + $0x10] sm:$0xff] }
   0x2   :  { %1068 = vmatprep.subr.msk.mxu0 %vm88_vm0, %v46_v0  ;;  %v47_v3 = vld [vmem:[%s1665_s1] sm:$0xff]  ;;  %v48_v7 = vld [vmem:[%s1665_s1 + $0x8] sm:$0xff]  ;;  %1170 = vset.pattern.permute.xlu1 %v1356_v4  ;;  %v54_v9 = vld [vmem:[%s1666_s2 + $0x18] sm:$0xff] }
   0x3   :  { %1069 = vmatpush1.msk.msra.mxu0 %vm88_vm0, %v45_v1  ;;  %v51_v5 = vld [vmem:[%s1666_s2] sm:$0xff]  ;;  %v52_v8 = vld [vmem:[%s1666_s2 + $0x8] sm:$0xff]  ;;  %67 = vperm.xlu1 %1170, %v53_v6   ;;  %v49_v10 = vld [vmem:[%s1665_s1 + $0x10] sm:$0xff] }
   0x4   :  { %1070 = vmatmul.mubr.msk.f32.vlgmr.msra.gmra.mrb[0].mxu0 %vm75_vm1, %v47_v3  ;;  %57 = vperm.xlu0 %1169, %v51_v5   ;;  %v248_v11 = vld [vmem:[%s1668_s4] sm:$0xff] }
   0x5   :  { %165 = vmatprep.mubr.f32.mxu0 %v1355_v2  ;;  %385 = vmatprep.mubr.f32.mxu1 %v1355_v2 }
   0x7   :  { %72 = vperm.xlu1 %1170, %v54_v9  }
   0x8   :  { %1071 = vmatmul.mubr.msk.f32.gmra.mrb[2].mxu0 %vm75_vm1, %v48_v7  ;;  %62 = vperm.xlu0 %1169, %v52_v8  }
   0x9   :  { %171 = vmatprep.mubr.f32.mxu0 %v1355_v2 }
   0xa   :  { %18 = vsyncpa [#allocation3], 0  ;;  %v249_v12 = vld [vmem:[%s1668_s4 + $0x8] sm:$0xff]  ;;  %v50_v13 = vld [vmem:[%s1665_s1 + $0x18] sm:$0xff]  ;;  %vm296_vm2 = vcmask 261120   ;;  %vm574_vm3 = vcmask 523264  }
   0xb   :  { %v250_v14 = vld [vmem:[%s1668_s4 + $0x10] sm:$0xff]  ;;  %263 = vperm.xlu1 %1170, %v249_v12   ;;  %v251_v15 = vld [vmem:[%s1668_s4 + $0x18] sm:$0xff]  ;;  %v252_v16 = vld [vmem:[%s1668_s4 + $0x20] sm:$0xff]  ;;  %vm864_vm4 = vcmask 130048   ;;  %vm960_vm5 = vcmask 64512  }
   0xc   :  { %1072 = vmatmul.mubr.msk.f32.gmra.mrb[4].mxu0 %vm75_vm1, %v49_v10  ;;  %258 = vperm.xlu0 %1169, %v248_v11   ;;  %v253_v17 = vld [vmem:[%s1668_s4 + $0x28] sm:$0xff]  ;;  %v254_v18 = vld [vmem:[%s1668_s4 + $0x30] sm:$0xff]  ;;  %v255_v19 = vld [vmem:[%s1668_s4 + $0x38] sm:$0xff] }
   0xd   :  { %177 = vmatprep.mubr.f32.mxu0 %v1355_v2  ;;  %v550_v20 = vld [vmem:[%s1670_s6] sm:$0xff]  ;;  %v551_v21 = vld [vmem:[%s1670_s6 + $0x8] sm:$0xff]  ;;  %v552_v22 = vld [vmem:[%s1670_s6 + $0x10] sm:$0xff] }
   0xe   :  { %v553_v23 = vld [vmem:[%s1670_s6 + $0x18] sm:$0xff]  ;;  %v734_v24 = vld [vmem:[%s1672_s8] sm:$0xff]  ;;  %v735_v25 = vld [vmem:[%s1672_s8 + $0x8] sm:$0xff] }
   0xf   :  { %273 = vperm.xlu1 %1170, %v251_v15   ;;  %v858_v26 = vld [vmem:[%s1674_s10] sm:$0xff] }
  0x10   :  { %1073 = vmatmul.mubr.msk.f32.gmra.mrb[6].mxu0 %vm75_vm1, %v50_v13  ;;  %268 = vperm.xlu0 %1169, %v250_v14   ;;  %v954_v27 = vld [vmem:[%s1676_s12] sm:$0x7] }
  0x11   :  { %651 = vmatprep.mubr.f32.mxu0 %v1355_v2 }
  0x13   :  { %283 = vperm.xlu1 %1170, %v253_v17  }
  0x14   :  { %278 = vperm.xlu0 %1169, %v252_v16  }
  0x17   :  { %293 = vperm.xlu1 %1170, %v255_v19  }
  0x18   :  { %288 = vperm.xlu0 %1169, %v254_v18  }
  0x1b   :  { %561 = vperm.xlu1 %1170, %v551_v21  }
  0x1c   :  { %556 = vperm.xlu0 %1169, %v550_v20  }
  0x1f   :  { %571 = vperm.xlu1 %1170, %v553_v23  }
  0x20   :  { %566 = vperm.xlu0 %1169, %v552_v22  }
  0x23   :  { %743 = vperm.xlu1 %1170, %v735_v25  }
  0x24   :  { %738 = vperm.xlu0 %1169, %v734_v24  }
  0x27   :  { %957 = vperm.xlu1 %1170, %v954_v27  }
  0x28   :  { %861 = vperm.xlu0 %1169, %v858_v26  }
  0x82   :  { %v68_v39 = vpop.permute.xlu1 %67 }
  0x83   :  { %v58_v28 = vpop.permute.xlu0 %57 }
  0x86   :  { %v73_v48 = vpop.permute.xlu1 %72 }
  0x87   :  { %v63_v34 = vpop.permute.xlu0 %62 }
  0xd7   :  { %v161_v29 = vpop.f32.mrb[0].mxu0 }
  0xd8   :  { %v162_v30 = vadd.f32 %v161_v29, %v58_v28  ;;  %v163_v31 = vpop.f32.mrb[1].mxu0  ;;  %v240_v29 = vld [vmem:[%s1667_s3] sm:$0xff] }
  0xd9   :  { %v164_v32 = vadd.f32 %v163_v31, %v58_v28  ;;  %v242_v31 = vld [vmem:[%s1667_s3 + $0x10] sm:$0xff] }
  0xda   :  { %v1074_v33 = vmul.f32 -1.442695, %v162_v30 }
  0xdb   :  { %v1075_v35 = vmul.f32 -1.442695, %v164_v32  ;;  %v167_v36 = vpop.f32.mrb[2].mxu0 }
  0xdc   :  { %1171 = vpow2.f32 %v1074_v33  ;;  %v168_v37 = vadd.f32 %v167_v36, %v63_v34  ;;  %v169_v38 = vpop.f32.mrb[3].mxu0  ;;  %v244_v33 = vld [vmem:[%s1667_s3 + $0x20] sm:$0xff]  ;;  %v247_v36 = vld [vmem:[%s1667_s3 + $0x38] sm:$0xff] }
  0xdd   :  { %1173 = vpow2.f32 %v1075_v35  ;;  %v170_v40 = vadd.f32 %v169_v38, %v63_v34  ;;  %v245_v34 = vld [vmem:[%s1667_s3 + $0x28] sm:$0xff]  ;;  %v246_v35 = vld [vmem:[%s1667_s3 + $0x30] sm:$0xff] }
  0xde   :  { %v1076_v41 = vmul.f32 -1.442695, %v168_v37 }
  0xdf   :  { %v1077_v42 = vmul.f32 -1.442695, %v170_v40  ;;  %v173_v43 = vpop.f32.mrb[4].mxu0 }
  0xe0   :  { %1175 = vpow2.f32 %v1076_v41  ;;  %v174_v44 = vadd.f32 %v173_v43, %v68_v39  ;;  %v175_v45 = vpop.f32.mrb[5].mxu0  ;;  %v264_v43 = vpop.permute.xlu1 %263 }
  0xe1   :  { %1177 = vpow2.f32 %v1077_v42  ;;  %v176_v46 = vadd.f32 %v175_v45, %v68_v39 }
  0xe2   :  { %v1078_v47 = vmul.f32 -1.442695, %v174_v44 }
  0xe3   :  { %v1079_v49 = vmul.f32 -1.442695, %v176_v46  ;;  %v179_v50 = vpop.f32.mrb[6].mxu0 }
  0xe4   :  { %1179 = vpow2.f32 %v1078_v47  ;;  %v180_v51 = vadd.f32 %v179_v50, %v73_v48  ;;  %v181_v52 = vpop.f32.mrb[7].mxu0 }
  0xe5   :  { %1181 = vpow2.f32 %v1079_v49  ;;  %v182_v53 = vadd.f32 %v181_v52, %v73_v48 }
  0xe6   :  { %v1172_v54 = vpop.eup %1171  ;;  %v1080_v55 = vmul.f32 -1.442695, %v180_v51 }
  0xe7   :  { %v1174_v56 = vpop.eup %1173  ;;  %v208_v57 = vadd.f32 1.0, %v1172_v54  ;;  %v1081_v58 = vmul.f32 -1.442695, %v182_v53 }
  0xe8   :  { %v209_v59 = vadd.f32 1.0, %v1174_v56  ;;  %1183 = vpow2.f32 %v1080_v55 }
  0xe9   :  { %1185 = vrcp.f32 %v208_v57  ;;  %v274_v57 = vpop.permute.xlu1 %273 }
  0xea   :  { %v1176_v60 = vpop.eup %1175  ;;  %1187 = vpow2.f32 %v1081_v58 }
  0xeb   :  { %v1178_v61 = vpop.eup %1177  ;;  %v210_v62 = vadd.f32 1.0, %v1176_v60  ;;  %1189 = vrcp.f32 %v209_v59 }
  0xec   :  { %v211_v63 = vadd.f32 1.0, %v1178_v61 }
  0xed   :  { %1191 = vrcp.f32 %v210_v62 }
  0xee   :  { %v1180_v0 = vpop.eup %1179  ;;  %1193 = vrcp.f32 %v211_v63 }
  0xef   :  { %v1182_v1 = vpop.eup %1181  ;;  %v212_v3 = vadd.f32 1.0, %v1180_v0 }
  0xf0   :  { %v213_v5 = vadd.f32 1.0, %v1182_v1 }
  0xf1   :  { %1195 = vrcp.f32 %v212_v3 }
  0xf2   :  { %v1184_v4 = vpop.eup %1183 }
  0xf3   :  { %v214_v6 = vadd.f32 1.0, %v1184_v4  ;;  %v1186_v7 = vpop.eup %1185 }
  0xf4   :  { %v1188_v8 = vpop.eup %1187  ;;  %v232_v13 = vmul.f32 %v1186_v7, %v162_v30  ;;  %v241_v30 = vld [vmem:[%s1667_s3 + $0x8] sm:$0xff] }
  0xf5   :  { %1197 = vrcp.f32 %v214_v6  ;;  %v1190_v9 = vpop.eup %1189  ;;  %v215_v10 = vadd.f32 1.0, %v1188_v8 }
  0xf6   :  { %1199 = vrcp.f32 %v213_v5  ;;  %v233_v15 = vmul.f32 %v1190_v9, %v164_v32  ;;  %v243_v32 = vld [vmem:[%s1667_s3 + $0x18] sm:$0xff] }
  0xf7   :  { %v1192_v11 = vpop.eup %1191  ;;  %1201 = vrcp.f32 %v215_v10 }
  0xf8   :  { %v1194_v12 = vpop.eup %1193  ;;  %v234_v14 = vmul.f32 %v1192_v11, %v168_v37  ;;  %v259_v37 = vpop.permute.xlu0 %258 }
  0xf9   :  { %v235_v16 = vmul.f32 %v1194_v12, %v170_v40 }
  0xfa   :  { %v1132_v17 = vpack.c.bf16 %v234_v14, %v232_v13  ;;  %v284_v14 = vpop.permute.xlu1 %283 }
  0xfb   :  { %v1130_v18 = vpack.c.bf16 %v235_v16, %v233_v15  ;;  %v1196_v19 = vpop.eup %1195 }
  0xfc   :  { %v236_v22 = vmul.f32 %v1196_v19, %v174_v44  ;;  %v269_v50 = vpop.permute.xlu0 %268 }
  0xfd   :  { %1131 = vmatprep.subr.bf16.mxu1 %v1130_v18 }
  0xfe   :  { %1133 = vmatpush1.bf16.msra.mxu1 %v1132_v17 }
  0xff   :  { %v1198_v20 = vpop.eup %1197 }
 0x100   :  { %v1200_v21 = vpop.eup %1199  ;;  %v238_v23 = vmul.f32 %v1198_v20, %v180_v51  ;;  %v279_v3 = vpop.permute.xlu0 %278 }
 0x101   :  { %v1202_v24 = vpop.eup %1201  ;;  %v237_v26 = vmul.f32 %v1200_v21, %v176_v46 }
 0x102   :  { %v1136_v25 = vpack.c.bf16 %v238_v23, %v236_v22  ;;  %v239_v27 = vmul.f32 %v1202_v24, %v182_v53 }
 0x104   :  { %v1134_v28 = vpack.c.bf16 %v239_v27, %v237_v26 }
 0x106   :  { %1135 = vmatprep.subr.bf16.mxu1 %v1134_v28 }
 0x107   :  { %1137 = vmatpush1.bf16.msra.mxu1 %v1136_v25  ;;  %v289_v25 = vpop.permute.xlu0 %288 }
 0x10a   :  { %1082 = vmatmul.mubr.msk.f32.vlgmr.msra.gmra.mrb[0].mxu1 %vm296_vm2, %v240_v29 }
 0x10b   :  { %391 = vmatprep.mubr.f32.mxu1 %v1355_v2 }
 0x10e   :  { %1083 = vmatmul.mubr.msk.f32.gmra.mrb[2].mxu1 %vm296_vm2, %v241_v30 }
 0x10f   :  { %397 = vmatprep.mubr.f32.mxu1 %v1355_v2 }
 0x112   :  { %1084 = vmatmul.mubr.msk.f32.gmra.mrb[4].mxu1 %vm296_vm2, %v242_v31 }
 0x113   :  { %403 = vmatprep.mubr.f32.mxu1 %v1355_v2 }
 0x116   :  { %1085 = vmatmul.mubr.msk.f32.gmra.mrb[6].mxu1 %vm296_vm2, %v243_v32 }
 0x117   :  { %409 = vmatprep.mubr.f32.mxu1 %v1355_v2 }
 0x11a   :  { %1086 = vmatmul.mubr.msk.f32.gmra.mrb[8].mxu1 %vm296_vm2, %v244_v33 }
 0x11b   :  { %415 = vmatprep.mubr.f32.mxu1 %v1355_v2 }
 0x11e   :  { %1087 = vmatmul.mubr.msk.f32.gmra.mrb[10].mxu1 %vm296_vm2, %v245_v34 }
 0x11f   :  { %421 = vmatprep.mubr.f32.mxu1 %v1355_v2 }
 0x122   :  { %1088 = vmatmul.mubr.msk.f32.gmra.mrb[12].mxu1 %vm296_vm2, %v246_v35 }
 0x123   :  { %427 = vmatprep.mubr.f32.mxu1 %v1355_v2 }
 0x126   :  { %1089 = vmatmul.mubr.msk.f32.gmra.mrb[14].mxu1 %vm296_vm2, %v247_v36  ;;  %v294_v36 = vpop.permute.xlu1 %293 }
 0x127   :  { %932 = vmatprep.mubr.f32.mxu1 %v1355_v2 }
 0x1dd   :  { %v387_v38 = vpop.f32.mrb[0].mxu1 }
 0x1de   :  { %v1556_v39 = vadd.f32 %v387_v38, %v259_v37  ;;  %v389_v40 = vpop.f32.mrb[1].mxu1 }
 0x1df   :  { %v1558_v41 = vadd.f32 %v389_v40, %v259_v37 }
 0x1e0   :  { %v1090_v42 = vmul.f32 -1.442695, %v1556_v39 }
 0x1e1   :  { %v1091_v44 = vmul.f32 -1.442695, %v1558_v41  ;;  %v393_v45 = vpop.f32.mrb[2].mxu1 }
 0x1e2   :  { %1203 = vpow2.f32 %v1090_v42  ;;  %v1562_v46 = vadd.f32 %v393_v45, %v264_v43  ;;  %v395_v47 = vpop.f32.mrb[3].mxu1 }
 0x1e3   :  { %1205 = vpow2.f32 %v1091_v44  ;;  %v1564_v48 = vadd.f32 %v395_v47, %v264_v43 }
 0x1e4   :  { %v1092_v49 = vmul.f32 -1.442695, %v1562_v46 }
 0x1e5   :  { %v1093_v51 = vmul.f32 -1.442695, %v1564_v48  ;;  %v399_v52 = vpop.f32.mrb[4].mxu1 }
 0x1e6   :  { %1207 = vpow2.f32 %v1092_v49  ;;  %v1568_v53 = vadd.f32 %v399_v52, %v269_v50  ;;  %v401_v54 = vpop.f32.mrb[5].mxu1 }
 0x1e7   :  { %1209 = vpow2.f32 %v1093_v51  ;;  %v1570_v55 = vadd.f32 %v401_v54, %v269_v50 }
 0x1e8   :  { %v1094_v56 = vmul.f32 -1.442695, %v1568_v53 }
 0x1e9   :  { %v1095_v58 = vmul.f32 -1.442695, %v1570_v55  ;;  %v405_v59 = vpop.f32.mrb[6].mxu1 }
 0x1ea   :  { %1211 = vpow2.f32 %v1094_v56  ;;  %v1574_v60 = vadd.f32 %v405_v59, %v274_v57  ;;  %v407_v61 = vpop.f32.mrb[7].mxu1 }
 0x1eb   :  { %1213 = vpow2.f32 %v1095_v58  ;;  %v1576_v62 = vadd.f32 %v407_v61, %v274_v57 }
 0x1ec   :  { %v1204_v63 = vpop.eup %1203  ;;  %v1096_v0 = vmul.f32 -1.442695, %v1574_v60 }
 0x1ed   :  { %v1206_v1 = vpop.eup %1205  ;;  %v482_v4 = vadd.f32 1.0, %v1204_v63  ;;  %v1097_v5 = vmul.f32 -1.442695, %v1576_v62  ;;  %v411_v6 = vpop.f32.mrb[8].mxu1 }
 0x1ee   :  { %v483_v7 = vadd.f32 1.0, %v1206_v1  ;;  %1215 = vpow2.f32 %v1096_v0  ;;  %v1580_v8 = vadd.f32 %v411_v6, %v279_v3  ;;  %v413_v9 = vpop.f32.mrb[9].mxu1 }
 0x1ef   :  { %1217 = vrcp.f32 %v482_v4  ;;  %v1582_v10 = vadd.f32 %v413_v9, %v279_v3 }
 0x1f0   :  { %v1208_v11 = vpop.eup %1207  ;;  %1219 = vrcp.f32 %v483_v7  ;;  %v1098_v12 = vmul.f32 -1.442695, %v1580_v8 }
 0x1f1   :  { %v1210_v13 = vpop.eup %1209  ;;  %v484_v15 = vadd.f32 1.0, %v1208_v11  ;;  %1221 = vpow2.f32 %v1097_v5  ;;  %v1099_v16 = vmul.f32 -1.442695, %v1582_v10  ;;  %v417_v17 = vpop.f32.mrb[10].mxu1 }
 0x1f2   :  { %v485_v18 = vadd.f32 1.0, %v1210_v13  ;;  %1223 = vpow2.f32 %v1098_v12  ;;  %v1586_v19 = vadd.f32 %v417_v17, %v284_v14  ;;  %v419_v20 = vpop.f32.mrb[11].mxu1 }
 0x1f3   :  { %1225 = vrcp.f32 %v484_v15  ;;  %v1588_v21 = vadd.f32 %v419_v20, %v284_v14 }
 0x1f4   :  { %v1212_v22 = vpop.eup %1211  ;;  %1227 = vrcp.f32 %v485_v18  ;;  %v1100_v23 = vmul.f32 -1.442695, %v1586_v19 }
 0x1f5   :  { %v1214_v24 = vpop.eup %1213  ;;  %v486_v26 = vadd.f32 1.0, %v1212_v22  ;;  %1229 = vpow2.f32 %v1099_v16  ;;  %v1101_v27 = vmul.f32 -1.442695, %v1588_v21  ;;  %v423_v28 = vpop.f32.mrb[12].mxu1 }
 0x1f6   :  { %v487_v29 = vadd.f32 1.0, %v1214_v24  ;;  %1231 = vpow2.f32 %v1100_v23  ;;  %v1592_v30 = vadd.f32 %v423_v28, %v289_v25  ;;  %v425_v31 = vpop.f32.mrb[13].mxu1 }
 0x1f7   :  { %1233 = vrcp.f32 %v486_v26  ;;  %v1594_v32 = vadd.f32 %v425_v31, %v289_v25 }
 0x1f8   :  { %v1216_v33 = vpop.eup %1215  ;;  %1235 = vrcp.f32 %v487_v29  ;;  %v1102_v34 = vmul.f32 -1.442695, %v1592_v30 }
 0x1f9   :  { %v1218_v35 = vpop.eup %1217  ;;  %v488_v37 = vadd.f32 1.0, %v1216_v33  ;;  %1237 = vpow2.f32 %v1101_v27  ;;  %v1103_v38 = vmul.f32 -1.442695, %v1594_v32  ;;  %v429_v40 = vpop.f32.mrb[14].mxu1 }
 0x1fa   :  { %v1220_v42 = vpop.eup %1219  ;;  %1239 = vpow2.f32 %v1102_v34  ;;  %v1598_v43 = vadd.f32 %v429_v40, %v294_v36  ;;  %v431_v44 = vpop.f32.mrb[15].mxu1  ;;  %v530_v58 = vmul.f32 %v1218_v35, %v1556_v39 }
 0x1fb   :  { %v1222_v45 = vpop.eup %1221  ;;  %1241 = vrcp.f32 %v488_v37  ;;  %v1600_v47 = vadd.f32 %v431_v44, %v294_v36  ;;  %v531_v63 = vmul.f32 %v1220_v42, %v1558_v41 }
 0x1fc   :  { %v1224_v49 = vpop.eup %1223  ;;  %v489_v50 = vadd.f32 1.0, %v1222_v45  ;;  %1243 = vpow2.f32 %v1103_v38  ;;  %v1104_v51 = vmul.f32 -1.442695, %v1598_v43 }
 0x1fd   :  { %v1226_v52 = vpop.eup %1225  ;;  %v490_v54 = vadd.f32 1.0, %v1224_v49  ;;  %v1105_v56 = vmul.f32 -1.442695, %v1600_v47 }
 0x1fe   :  { %v1228_v57 = vpop.eup %1227  ;;  %v532_v59 = vmul.f32 %v1226_v52, %v1562_v46  ;;  %1245 = vrcp.f32 %v489_v50 }
 0x1ff   :  { %v1230_v61 = vpop.eup %1229  ;;  %v533_v0 = vmul.f32 %v1228_v57, %v1564_v48  ;;  %1247 = vrcp.f32 %v490_v54  ;;  %v562_v54 = vpop.permute.xlu1 %561 }
 0x200   :  { %v1232_v1 = vpop.eup %1231  ;;  %v1140_v3 = vpack.c.bf16 %v532_v59, %v530_v58  ;;  %v491_v4 = vadd.f32 1.0, %v1230_v61  ;;  %1249 = vpow2.f32 %v1104_v51 }
 0x201   :  { %v1234_v5 = vpop.eup %1233  ;;  %v492_v6 = vadd.f32 1.0, %v1232_v1  ;;  %1251 = vpow2.f32 %v1105_v56  ;;  %v1138_v7 = vpack.c.bf16 %v533_v0, %v531_v63 }
 0x202   :  { %v1236_v9 = vpop.eup %1235  ;;  %v534_v48 = vmul.f32 %v1234_v5, %v1568_v53 }
 0x203   :  { %v1238_v11 = vpop.eup %1237  ;;  %1253 = vrcp.f32 %v492_v6  ;;  %1139 = vmatprep.subr.bf16.mxu0 %v1138_v7  ;;  %v535_v20 = vmul.f32 %v1236_v9, %v1570_v55  ;;  %v572_v9 = vpop.permute.xlu1 %571 }
 0x204   :  { %v1240_v39 = vpop.eup %1239  ;;  %1255 = vrcp.f32 %v491_v4  ;;  %v493_v46 = vadd.f32 1.0, %v1238_v11  ;;  %1141 = vmatpush1.bf16.msra.mxu0 %v1140_v3 }
 0x205   :  { %v1242_v41 = vpop.eup %1241  ;;  %v494_v14 = vadd.f32 1.0, %v1240_v39 }
 0x206   :  { %v1244_v12 = vpop.eup %1243  ;;  %v536_v13 = vmul.f32 %v1242_v41, %v1574_v60  ;;  %1257 = vrcp.f32 %v493_v46 }
 0x207   :  { %v495_v17 = vadd.f32 1.0, %v1244_v12  ;;  %1259 = vrcp.f32 %v494_v14 }
 0x208   :  { %v1246_v15 = vpop.eup %1245  ;;  %v1144_v16 = vpack.c.bf16 %v536_v13, %v534_v48 }
 0x209   :  { %v1248_v18 = vpop.eup %1247  ;;  %v537_v22 = vmul.f32 %v1246_v15, %v1576_v62  ;;  %1261 = vrcp.f32 %v495_v17 }
 0x20a   :  { %v1250_v23 = vpop.eup %1249  ;;  %v538_v28 = vmul.f32 %v1248_v18, %v1580_v8 }
 0x20b   :  { %v1252_v24 = vpop.eup %1251  ;;  %v496_v25 = vadd.f32 1.0, %v1250_v23  ;;  %v1142_v26 = vpack.c.bf16 %v537_v22, %v535_v20 }
 0x20c   :  { %v497_v27 = vadd.f32 1.0, %v1252_v24 }
 0x20d   :  { %v1254_v53 = vpop.eup %1253  ;;  %1263 = vrcp.f32 %v496_v25  ;;  %1143 = vmatprep.subr.bf16.mxu0 %v1142_v26 }
 0x20e   :  { %v1256_v60 = vpop.eup %1255  ;;  %v540_v29 = vmul.f32 %v1254_v53, %v1586_v19  ;;  %1265 = vrcp.f32 %v497_v27  ;;  %1145 = vmatpush1.bf16.msra.mxu0 %v1144_v16 }
 0x20f   :  { %v539_v62 = vmul.f32 %v1256_v60, %v1582_v10  ;;  %v546_v10 = vld [vmem:[%s1669_s5] sm:$0xff] }
 0x210   :  { %v1258_v55 = vpop.eup %1257  ;;  %v1148_v31 = vpack.c.bf16 %v540_v29, %v538_v28 }
 0x211   :  { %v541_v33 = vmul.f32 %v1258_v55, %v1588_v21  ;;  %v1260_v35 = vpop.eup %1259  ;;  %v547_v21 = vld [vmem:[%s1669_s5 + $0x8] sm:$0xff] }
 0x212   :  { %v542_v40 = vmul.f32 %v1260_v35, %v1592_v30  ;;  %v548_v30 = vld [vmem:[%s1669_s5 + $0x10] sm:$0xff] }
 0x213   :  { %v1146_v34 = vpack.c.bf16 %v541_v33, %v539_v62  ;;  %v1262_v36 = vpop.eup %1261 }
 0x214   :  { %v543_v19 = vmul.f32 %v1262_v36, %v1594_v32  ;;  %v549_v32 = vld [vmem:[%s1669_s5 + $0x18] sm:$0xff] }
 0x215   :  { %1147 = vmatprep.subr.bf16.mxu0 %v1146_v34 }
 0x216   :  { %1149 = vmatpush1.bf16.msra.mxu0 %v1148_v31 }
 0x217   :  { %v1264_v37 = vpop.eup %1263 }
 0x218   :  { %v1266_v38 = vpop.eup %1265  ;;  %v544_v8 = vmul.f32 %v1264_v37, %v1598_v43  ;;  %v557_v43 = vpop.permute.xlu0 %556 }
 0x219   :  { %v545_v42 = vmul.f32 %v1266_v38, %v1600_v47 }
 0x21a   :  { %v1152_v44 = vpack.c.bf16 %v544_v8, %v542_v40 }
 0x21b   :  { %v1150_v45 = vpack.c.bf16 %v545_v42, %v543_v19 }
 0x21c   :  { %v567_v0 = vpop.permute.xlu0 %566 }
 0x21d   :  { %1151 = vmatprep.subr.bf16.mxu0 %v1150_v45 }
 0x21e   :  { %1153 = vmatpush1.bf16.msra.mxu0 %v1152_v44 }
 0x221   :  { %1106 = vmatmul.mubr.msk.f32.vlgmr.msra.gmra.mrb[8].mxu0 %vm574_vm3, %v546_v10 }
 0x222   :  { %657 = vmatprep.mubr.f32.mxu0 %v1355_v2 }
 0x225   :  { %1107 = vmatmul.mubr.msk.f32.gmra.mrb[10].mxu0 %vm574_vm3, %v547_v21 }
 0x226   :  { %663 = vmatprep.mubr.f32.mxu0 %v1355_v2 }
 0x229   :  { %1108 = vmatmul.mubr.msk.f32.gmra.mrb[12].mxu0 %vm574_vm3, %v548_v30 }
 0x22a   :  { %669 = vmatprep.mubr.f32.mxu0 %v1355_v2 }
 0x22d   :  { %1109 = vmatmul.mubr.msk.f32.gmra.mrb[14].mxu0 %vm574_vm3, %v549_v32 }
 0x22e   :  { %816 = vmatprep.mubr.f32.mxu0 %v1355_v2 }
 0x2f4   :  { %v653_v47 = vpop.f32.mrb[8].mxu0 }
 0x2f5   :  { %v654_v49 = vadd.f32 %v653_v47, %v557_v43  ;;  %v655_v50 = vpop.f32.mrb[9].mxu0  ;;  %v732_v47 = vld [vmem:[%s1671_s7] sm:$0xff] }
 0x2f6   :  { %v656_v51 = vadd.f32 %v655_v50, %v557_v43  ;;  %v739_v50 = vpop.permute.xlu0 %738 }
 0x2f7   :  { %v1110_v52 = vmul.f32 -1.442695, %v654_v49 }
 0x2f8   :  { %v1111_v56 = vmul.f32 -1.442695, %v656_v51  ;;  %v659_v57 = vpop.f32.mrb[10].mxu0 }
 0x2f9   :  { %1267 = vpow2.f32 %v1110_v52  ;;  %v660_v58 = vadd.f32 %v659_v57, %v562_v54  ;;  %v661_v59 = vpop.f32.mrb[11].mxu0 }
 0x2fa   :  { %1269 = vpow2.f32 %v1111_v56  ;;  %v662_v61 = vadd.f32 %v661_v59, %v562_v54 }
 0x2fb   :  { %v1112_v63 = vmul.f32 -1.442695, %v660_v58 }
 0x2fc   :  { %v1113_v1 = vmul.f32 -1.442695, %v662_v61  ;;  %v665_v3 = vpop.f32.mrb[12].mxu0 }
 0x2fd   :  { %1271 = vpow2.f32 %v1112_v63  ;;  %v666_v4 = vadd.f32 %v665_v3, %v567_v0  ;;  %v667_v5 = vpop.f32.mrb[13].mxu0 }
 0x2fe   :  { %1273 = vpow2.f32 %v1113_v1  ;;  %v668_v6 = vadd.f32 %v667_v5, %v567_v0 }
 0x2ff   :  { %v1114_v7 = vmul.f32 -1.442695, %v666_v4 }
 0x300   :  { %v1115_v11 = vmul.f32 -1.442695, %v668_v6  ;;  %v671_v39 = vpop.f32.mrb[14].mxu0 }
 0x301   :  { %1275 = vpow2.f32 %v1114_v7  ;;  %v672_v46 = vadd.f32 %v671_v39, %v572_v9  ;;  %v673_v41 = vpop.f32.mrb[15].mxu0 }
 0x302   :  { %1277 = vpow2.f32 %v1115_v11  ;;  %v674_v12 = vadd.f32 %v673_v41, %v572_v9 }
 0x303   :  { %v1268_v48 = vpop.eup %1267  ;;  %v1116_v13 = vmul.f32 -1.442695, %v672_v46 }
 0x304   :  { %v1270_v14 = vpop.eup %1269  ;;  %v700_v15 = vadd.f32 1.0, %v1268_v48  ;;  %v1117_v16 = vmul.f32 -1.442695, %v674_v12 }
 0x305   :  { %v701_v17 = vadd.f32 1.0, %v1270_v14  ;;  %1279 = vpow2.f32 %v1116_v13 }
 0x306   :  { %1281 = vrcp.f32 %v700_v15 }
 0x307   :  { %v1272_v18 = vpop.eup %1271  ;;  %1283 = vpow2.f32 %v1117_v16 }
 0x308   :  { %v1274_v20 = vpop.eup %1273  ;;  %v702_v22 = vadd.f32 1.0, %v1272_v18  ;;  %1285 = vrcp.f32 %v701_v17 }
 0x309   :  { %v703_v23 = vadd.f32 1.0, %v1274_v20 }
 0x30a   :  { %1287 = vrcp.f32 %v702_v22  ;;  %v857_v22 = vld [vmem:[%s1673_s9] sm:$0xff] }
 0x30b   :  { %v1276_v24 = vpop.eup %1275  ;;  %1289 = vrcp.f32 %v703_v23  ;;  %v862_v23 = vpop.permute.xlu0 %861 }
 0x30c   :  { %v1278_v25 = vpop.eup %1277  ;;  %v704_v26 = vadd.f32 1.0, %v1276_v24 }
 0x30d   :  { %v705_v53 = vadd.f32 1.0, %v1278_v25 }
 0x30e   :  { %1291 = vrcp.f32 %v704_v26 }
 0x30f   :  { %v1280_v27 = vpop.eup %1279 }
 0x310   :  { %v706_v60 = vadd.f32 1.0, %v1280_v27  ;;  %v1282_v28 = vpop.eup %1281 }
 0x311   :  { %v1284_v29 = vpop.eup %1283  ;;  %v724_v34 = vmul.f32 %v1282_v28, %v654_v49  ;;  %v733_v49 = vld [vmem:[%s1671_s7 + $0x8] sm:$0xff] }
 0x312   :  { %1293 = vrcp.f32 %v706_v60  ;;  %v1286_v55 = vpop.eup %1285  ;;  %v707_v31 = vadd.f32 1.0, %v1284_v29 }
 0x313   :  { %1295 = vrcp.f32 %v705_v53  ;;  %v725_v36 = vmul.f32 %v1286_v55, %v656_v51 }
 0x314   :  { %v1288_v62 = vpop.eup %1287  ;;  %1297 = vrcp.f32 %v707_v31 }
 0x315   :  { %v1290_v33 = vpop.eup %1289  ;;  %v726_v35 = vmul.f32 %v1288_v62, %v660_v58  ;;  %v744_v58 = vpop.permute.xlu1 %743 }
 0x316   :  { %v727_v37 = vmul.f32 %v1290_v33, %v662_v61 }
 0x317   :  { %v1156_v38 = vpack.c.bf16 %v726_v35, %v724_v34 }
 0x318   :  { %v1154_v40 = vpack.c.bf16 %v727_v37, %v725_v36  ;;  %v1292_v8 = vpop.eup %1291  ;;  %v953_v36 = vld [vmem:[%s1675_s11] sm:$0x7]  ;;  %s1357_s11 = smov [#allocation2]  }
 0x319   :  { %v728_v44 = vmul.f32 %v1292_v8, %v666_v4  ;;  %v958_v37 = vpop.permute.xlu1 %957  ;;  %s1060_s12 = sshll.u32 %s1357_s11, 4  ;;  %s1061_s12 = int_to_ptr.vmem [resolvable:$true] %s1060_s12 }
 0x31a   :  { %1155 = vmatprep.subr.bf16.mxu0 %v1154_v40  ;;  %s1331_s18 = scalar_lea.vmem %s1061_s12, 128  ;;  %p1336_p1 = scmp.lt.s32.totalorder %s1061_s12, %s1061_s12 }
 0x31b   :  { %1157 = vmatpush1.bf16.msra.mxu0 %v1156_v38  ;;  %p1332_p0 = scmp.ne.s32.totalorder %s1061_s12, %s1331_s18  ;;  %p1337_p2 = scmp.lt.s32.totalorder %s1331_s18, %s1331_s18 }
 0x31c   :  { %v1294_v19 = vpop.eup %1293 }
 0x31d   :  { %v1296_v42 = vpop.eup %1295  ;;  %v730_v45 = vmul.f32 %v1294_v19, %v672_v46  ;;  %p1338_p3 = por %p1337_p2, %p1336_p1 }
 0x31e   :  { %v1298_v10 = vpop.eup %1297  ;;  %v729_v30 = vmul.f32 %v1296_v42, %v668_v6 }
 0x31f   :  { %v1160_v21 = vpack.c.bf16 %v730_v45, %v728_v44  ;;  %v731_v32 = vmul.f32 %v1298_v10, %v674_v12  ;;  %p1339_p4 = pnand %p1338_p3, %p1332_p0 }
 0x321   :  { %v1158_v43 = vpack.c.bf16 %v731_v32, %v729_v30 }
 0x323   :  { %1159 = vmatprep.subr.bf16.mxu0 %v1158_v43 }
 0x324   :  { %1161 = vmatpush1.bf16.msra.mxu0 %v1160_v21 }
 0x327   :  { %1118 = vmatmul.mubr.msk.f32.vlgmr.msra.gmra.mrb[16].mxu0 %vm296_vm2, %v732_v47 }
 0x328   :  { %822 = vmatprep.mubr.f32.mxu0 %v1355_v2 }
 0x32b   :  { %1119 = vmatmul.mubr.msk.f32.gmra.mrb[18].mxu0 %vm296_vm2, %v733_v49 }
 0x32c   :  { %1028 = vmatprep.mubr.f32.mxu0 %v1355_v2 }
 0x3fa   :  { %v818_v51 = vpop.f32.mrb[16].mxu0 }
 0x3fb   :  { %v819_v52 = vadd.f32 %v818_v51, %v739_v50  ;;  %v820_v54 = vpop.f32.mrb[17].mxu0 }
 0x3fc   :  { %v821_v56 = vadd.f32 %v820_v54, %v739_v50 }
 0x3fd   :  { %v1120_v57 = vmul.f32 -1.442695, %v819_v52 }
 0x3fe   :  { %v1121_v59 = vmul.f32 -1.442695, %v821_v56  ;;  %v824_v61 = vpop.f32.mrb[18].mxu0 }
 0x3ff   :  { %1299 = vpow2.f32 %v1120_v57  ;;  %v825_v63 = vadd.f32 %v824_v61, %v744_v58  ;;  %v826_v0 = vpop.f32.mrb[19].mxu0 }
 0x400   :  { %1301 = vpow2.f32 %v1121_v59  ;;  %v827_v1 = vadd.f32 %v826_v0, %v744_v58 }
 0x401   :  { %v1122_v3 = vmul.f32 -1.442695, %v825_v63 }
 0x402   :  { %v1123_v4 = vmul.f32 -1.442695, %v827_v1 }
 0x403   :  { %1303 = vpow2.f32 %v1122_v3 }
 0x404   :  { %1305 = vpow2.f32 %v1123_v4 }
 0x409   :  { %v1300_v5 = vpop.eup %1299 }
 0x40a   :  { %v1302_v2 = vpop.eup %1301  ;;  %v841_v6 = vadd.f32 1.0, %v1300_v5 }
 0x40b   :  { %v842_v7 = vadd.f32 1.0, %v1302_v2 }
 0x40c   :  { %1307 = vrcp.f32 %v841_v6 }
 0x40d   :  { %v1304_v9 = vpop.eup %1303  ;;  %1309 = vrcp.f32 %v842_v7 }
 0x40e   :  { %v1306_v11 = vpop.eup %1305  ;;  %v843_v39 = vadd.f32 1.0, %v1304_v9 }
 0x40f   :  { %v844_v46 = vadd.f32 1.0, %v1306_v11 }
 0x410   :  { %1311 = vrcp.f32 %v843_v39 }
 0x411   :  { %1313 = vrcp.f32 %v844_v46 }
 0x416   :  { %v1308_v41 = vpop.eup %1307 }
 0x417   :  { %v1310_v12 = vpop.eup %1309  ;;  %v853_v14 = vmul.f32 %v1308_v41, %v819_v52 }
 0x418   :  { %v854_v16 = vmul.f32 %v1310_v12, %v821_v56 }
 0x41a   :  { %v1312_v48 = vpop.eup %1311 }
 0x41b   :  { %v1314_v13 = vpop.eup %1313  ;;  %v855_v15 = vmul.f32 %v1312_v48, %v825_v63 }
 0x41c   :  { %v856_v17 = vmul.f32 %v1314_v13, %v827_v1 }
 0x41d   :  { %v1164_v18 = vpack.c.bf16 %v855_v15, %v853_v14 }
 0x41e   :  { %v1162_v20 = vpack.c.bf16 %v856_v17, %v854_v16 }
 0x420   :  { %1163 = vmatprep.subr.bf16.mxu1 %v1162_v20 }
 0x421   :  { %1165 = vmatpush1.bf16.msra.mxu1 %v1164_v18 }
 0x424   :  { %1124 = vmatmul.mubr.msk.f32.vlgmr.msra.gmra.mrb[16].mxu1 %vm864_vm4, %v857_v22 }
 0x4f7   :  { %v934_v24 = vpop.f32.mrb[16].mxu1 }
 0x4f8   :  { %v935_v25 = vadd.f32 %v934_v24, %v862_v23  ;;  %v936_v26 = vpop.f32.mrb[17].mxu1 }
 0x4f9   :  { %v937_v27 = vadd.f32 %v936_v26, %v862_v23 }
 0x4fa   :  { %v1125_v53 = vmul.f32 -1.442695, %v935_v25 }
 0x4fb   :  { %v1126_v60 = vmul.f32 -1.442695, %v937_v27 }
 0x4fc   :  { %1315 = vpow2.f32 %v1125_v53 }
 0x4fd   :  { %1317 = vpow2.f32 %v1126_v60 }
 0x506   :  { %v1316_v28 = vpop.eup %1315 }
 0x507   :  { %v1318_v29 = vpop.eup %1317  ;;  %v945_v55 = vadd.f32 1.0, %v1316_v28 }
 0x508   :  { %v946_v31 = vadd.f32 1.0, %v1318_v29 }
 0x509   :  { %1319 = vrcp.f32 %v945_v55 }
 0x50a   :  { %1321 = vrcp.f32 %v946_v31 }
 0x513   :  { %v1320_v62 = vpop.eup %1319 }
 0x514   :  { %v1322_v33 = vpop.eup %1321  ;;  %v951_v35 = vmul.f32 %v1320_v62, %v935_v25 }
 0x515   :  { %v952_v34 = vmul.f32 %v1322_v33, %v937_v27 }
 0x517   :  { %964 = vmatprep.subr.mxu0 %v952_v34 }
 0x518   :  { %965 = vmatpush1.msra.mxu0 %v951_v35 }
 0x519   :  { %1127 = vmatmul.mubr.msk.f32.vlgmr.msra.gmra.mrb[20].mxu0 %vm960_vm5, %v953_v36 }
 0x5ec   :  { %v1030_v38 = vpop.f32.mrb[20].mxu0 }
 0x5ed   :  { %v1031_v40 = vadd.f32 %v1030_v38, %v958_v37  ;;  %v1032_v8 = vpop.f32.mrb[21].mxu0 }
 0x5ee   :  { %v1033_v19 = vadd.f32 %v1032_v8, %v958_v37 }
 0x5ef   :  { %v1128_v42 = vmul.f32 -1.442695, %v1031_v40 }
 0x5f0   :  { %v1129_v44 = vmul.f32 -1.442695, %v1033_v19 }
 0x5f1   :  { %1323 = vpow2.f32 %v1128_v42 }
 0x5f2   :  { %1325 = vpow2.f32 %v1129_v44 }
 0x5fb   :  { %v1324_v45 = vpop.eup %1323 }
 0x5fc   :  { %v1326_v10 = vpop.eup %1325  ;;  %v1041_v21 = vadd.f32 1.0, %v1324_v45 }
 0x5fd   :  { %v1042_v30 = vadd.f32 1.0, %v1326_v10 }
 0x5fe   :  { %1327 = vrcp.f32 %v1041_v21 }
 0x5ff   :  { %1329 = vrcp.f32 %v1042_v30 }
 0x608   :  { %v1328_v32 = vpop.eup %1327 }
 0x609   :  { %v1330_v43 = vpop.eup %1329  ;;  %v1047_v47 = vmul.f32 %v1328_v32, %v1031_v40 }
 0x60a   :  { %v1048_v49 = vmul.f32 %v1330_v43, %v1033_v19 }
 0x60c   :  { %v1051_v50 = vcombine.low %v1047_v47, %v1048_v49 }
 0x60e   :  { %1053 = vst [vmem:[#allocation2] sm:$0x77] %v1051_v50 }
 0x60f   :  { %1342 = shalt.err (!%p1339_p4)
}
 0x610   :  { %s1343_s21 = scalar_lea.hbm %s1677_s13, 128 }
 0x611   :  { %p1344_p5 = scmp.ne.s32.totalorder %s1677_s13, %s1343_s21  ;;  %p1347_p6 = scmp.lt.u32.totalorder %s1343_s21, %s1677_s13 }
 0x613   :  { %p1349_p7 = pnand %p1347_p6, %p1344_p5 }
 0x615   :  { %1352 = shalt.err (!%p1349_p7)
}
 0x616   :  { %1063 = dma.vmem_to_hbm [thread:$0]  %s1061_s12, 128, %s1677_s13, [#allocation3]  }
 0x617   :  { %1353 = dma.done.wait [#allocation3], 128  }
 0x618   :  { %1354 = vsyncadd [#allocation3], 4294967168 }
 0x619   :  { %1067 = vsyncpa [#allocation3], 1 }

</bundles_post_ra>
